<compile_context>
chip_gen: v6e
topology: v6e:2x2x1
jax: 0.10.0
libtpu: 0.0.40
codegen_flags: <defaults>
</compile_context>

<pallas_src>
import jax
import jax.numpy as jnp
import numpy as np
from jax.experimental import pallas as pl
from jax.experimental.pallas import tpu as pltpu


def _pointnet_kernel(x_ref,
                     w1_ref, t1_ref,
                     w2_ref, t2_ref,
                     w3_ref, t3_ref,
                     out_ref):
    """Fused (conv1x1 -> shift -> relu) x2 -> conv1x1 -> shift.

    BN scale is pre-folded into the weights, so each epilogue is just add(+relu).

    x_ref:   (C_in, tn)       one batch's tile of points (points on lanes)
    w1_ref:  (C1, C_in)       f32 scale-folded weights (VPU layer)
    w2/w3:   (C_out, C_in)    bf16 scale-folded weights (MXU layers)
    t*_ref:  (C_out, 1)       folded BN shift (f32)
    out_ref: (C3, tn)
    """
    x = x_ref[...].astype(jnp.float32)            # (C_in, tn)
    w1 = w1_ref[...]                              # (C1, C_in) f32
    c_in = w1.shape[1]

    # Layer 1: K = C_in (=3) contraction as C_in broadcast-FMAs on the VPU
    # (avoids a lane/K-sparse MXU pass; overlaps with MXU work in other slots).
    h1 = w1[:, 0:1] * x[0:1, :]
    for k in range(1, c_in):
        h1 = h1 + w1[:, k:k + 1] * x[k:k + 1, :]
    h1 = jnp.maximum(h1 + t1_ref[...], 0.0)

    # Layers 2/3: bf16 MXU matmuls, f32 accumulation, shift-only epilogue.
    h2 = jnp.dot(w2_ref[...], h1.astype(jnp.bfloat16),
                 preferred_element_type=jnp.float32)
    h2 = jnp.maximum(h2 + t2_ref[...], 0.0)

    h3 = jnp.dot(w3_ref[...], h2.astype(jnp.bfloat16),
                 preferred_element_type=jnp.float32)
    out_ref[...] = (h3 + t3_ref[...]).astype(out_ref.dtype)


def _fold_bn_into_weight(w, conv_b, gamma, beta, mean, var, eps=1e-5):
    """Fold conv bias + eval-mode BatchNorm into the weight and a shift.

    Returns (w_scaled [C_out, C_in] f32, shift [C_out, 1] f32) such that
    BN(conv(x)) == w_scaled @ x + shift.
    """
    inv_std = 1.0 / jnp.sqrt(var + eps)
    scale = gamma * inv_std                               # (C_out,)
    w_scaled = w * scale[:, None]                         # fold scale into W
    shift = (conv_b - mean) * scale + beta                # (C_out,)
    return w_scaled, shift[:, None]                       # (C_out,1) lane-bcast


def _vmem_bytes_estimate(c_in, c1, c2, c3, tn, out_itemsize):
    """Rough per-step VMEM footprint (double-buffered I/O + f32 intermediates)."""
    inp = 2 * max(c_in, 8) * tn * 4                      # double-buffered input
    out = 2 * c3 * tn * out_itemsize                     # double-buffered output
    inter = (c1 + c2 + c3) * tn * (4 + 2)                # f32 h + bf16 copies
    weights = 2 * (c1 * c_in * 4 + c2 * c1 * 2 + c3 * c2 * 2
                   + (c1 + c2 + c3) * 4)
    return inp + out + inter + weights


def pointnetfeat_forward(x, params, *, tn=2048, out_dtype=jnp.bfloat16):
    """x: [B, C_in, N] (PyTorch NCW, f32). Returns [B, output_dim, N].

    out_dtype defaults to bf16 (halves the dominant HBM writeback); pass
    jnp.float32 for bit-closer PyTorch semantics.
    """
    B, C_in, N = x.shape
    w1, t1 = params["w1"], params["t1"]
    w2, t2 = params["w2"], params["t2"]
    w3, t3 = params["w3"], params["t3"]
    C1, C2, C3 = w1.shape[0], w2.shape[0], w3.shape[0]

    # Lane-dense tiling of the point axis: pad N up to a multiple of 128, pick
    # the tile, then pad to a multiple of the tile. Padded (zero) points get
    # the BN shift applied but are sliced off below, so they are harmless.
    N_pad = ((N + 127) // 128) * 128
    tn = max(128, (tn // 128) * 128)
    tn = min(tn, N_pad)

    # VMEM budget: keep the per-step footprint comfortably inside v7x's 64 MiB
    # per-TC VMEM (v5e/v6e have 128 MiB, so this cap is never binding there).
    out_itemsize = jnp.dtype(out_dtype).itemsize
    while tn > 512 and _vmem_bytes_estimate(C_in, C1, C2, C3, tn,
                                            out_itemsize) > (48 << 20):
        tn //= 2
    vmem_est = _vmem_bytes_estimate(C_in, C1, C2, C3, tn, out_itemsize)
    vmem_limit = min(max(int(vmem_est * 1.5) + (4 << 20), 32 << 20), 64 << 20)

    N_pad = ((N_pad + tn - 1) // tn) * tn
    if N_pad != N:
        x = jnp.pad(x, ((0, 0), (0, 0), (0, N_pad - N)))

    grid = (B, N_pad // tn)

    def const(shape):
        # Weights / shifts stay VMEM-resident: constant block index, no re-DMA.
        return pl.BlockSpec(shape, lambda b, j: (0, 0))

    out = pl.pallas_call(
        _pointnet_kernel,
        out_shape=jax.ShapeDtypeStruct((B, C3, N_pad), out_dtype),
        grid=grid,
        in_specs=[
            pl.BlockSpec((None, C_in, tn), lambda b, j: (b, 0, j)),
            const(w1.shape), const(t1.shape),
            const(w2.shape), const(t2.shape),
            const(w3.shape), const(t3.shape),
        ],
        out_specs=pl.BlockSpec((None, C3, tn), lambda b, j: (b, 0, j)),
        compiler_params=pltpu.CompilerParams(
            dimension_semantics=("parallel", "parallel"),
            vmem_limit_bytes=vmem_limit),
    )(x, w1, t1, w2, t2, w3, t3)

    return out[:, :, :N]


def make_params(key, input_dim=3, output_dim=256):
    """Deterministic synthetic parameters (conv weights/bias + BN stats),
    with BN scale folded into the weights and bias/stats folded into a shift."""
    dims = [(input_dim, 64), (64, 128), (128, output_dim)]
    keys = jax.random.split(key, 3 * 6)
    params = {}
    for layer, (cin, cout) in enumerate(dims, start=1):
        k = keys[(layer - 1) * 6:(layer - 1) * 6 + 6]
        # PyTorch Conv1d weight is (C_out, C_in, 1); we keep (C_out, C_in).
        w = jax.random.normal(k[0], (cout, cin), jnp.float32) * 0.1
        b = jax.random.normal(k[1], (cout,), jnp.float32) * 0.1
        gamma = 1.0 + 0.1 * jax.random.normal(k[2], (cout,), jnp.float32)
        beta = 0.1 * jax.random.normal(k[3], (cout,), jnp.float32)
        mean = 0.1 * jax.random.normal(k[4], (cout,), jnp.float32)
        var = jnp.abs(jax.random.normal(k[5], (cout,), jnp.float32)) + 0.5
        w_scaled, shift = _fold_bn_into_weight(w, b, gamma, beta, mean, var)
        if layer == 1:
            params["w1"] = w_scaled                       # f32 (tiny, VPU path)
        else:
            params[f"w{layer}"] = w_scaled.astype(jnp.bfloat16)  # MXU fast path
        params[f"t{layer}"] = shift                       # (C, 1) f32
    return params


def reference_forward(x, params):
    """Pure-JAX reference of the same eval-mode forward (same scale-folded
    weights, bf16 inter-layer activations, f32 accumulation)."""
    h = jnp.einsum("oc,bcn->bon", params["w1"], x)
    h = jnp.maximum(h + params["t1"][None], 0.0)

    h = jnp.einsum("oc,bcn->bon", params["w2"], h.astype(jnp.bfloat16),
                   preferred_element_type=jnp.float32)
    h = jnp.maximum(h + params["t2"][None], 0.0)

    h = jnp.einsum("oc,bcn->bon", params["w3"], h.astype(jnp.bfloat16),
                   preferred_element_type=jnp.float32)
    return h + params["t3"][None]


if __name__ == "__main__":
    key = jax.random.PRNGKey(0)
    k_x, k_p = jax.random.split(key)

    B, C_in, N = 2, 3, 16          # small NCW point cloud: 2 batches x 16 points
    output_dim = 256               # small stand-in for the default 1024

    x = jax.random.normal(k_x, (B, C_in, N), jnp.float32)
    params = make_params(k_p, input_dim=C_in, output_dim=output_dim)

    out = pointnetfeat_forward(x, params)
    out = jax.block_until_ready(out)

    ref = reference_forward(x, params)
    np.testing.assert_allclose(np.asarray(out, dtype=np.float32),
                               np.asarray(ref, dtype=np.float32),
                               rtol=2e-2, atol=2e-2)
    print("KERNEL_OK")
</pallas_src>

<mosaic_0001>
module attributes {stable_mosaic.version = 11 : i64} {
  func.func @_pointnet_kernel(%arg0: i32, %arg1: i32, %arg2: memref<1x3x128xf32, #tpu.memory_space<vmem>>, %arg3: memref<64x3xf32, #tpu.memory_space<vmem>>, %arg4: memref<64x1xf32, #tpu.memory_space<vmem>>, %arg5: memref<128x64xbf16, #tpu.memory_space<vmem>>, %arg6: memref<128x1xf32, #tpu.memory_space<vmem>>, %arg7: memref<256x128xbf16, #tpu.memory_space<vmem>>, %arg8: memref<256x1xf32, #tpu.memory_space<vmem>>, %arg9: memref<1x256x128xbf16, #tpu.memory_space<vmem>>) attributes {dimension_semantics = [#tpu.dimension_semantics<parallel>, #tpu.dimension_semantics<parallel>], iteration_bounds = array<i64: 2, 1>, scalar_prefetch = 0 : i64, scratch_operands = 0 : i64, tpu.core_type = #tpu.core_type<tc>, window_params = [{transform_indices = @transform_0, window_bounds = array<i64: 1, 3, 128>}, {pipeline_mode = #tpu.pipeline_mode<synchronous>, transform_indices = @transform_1, window_bounds = array<i64: 64, 3>}, {pipeline_mode = #tpu.pipeline_mode<synchronous>, transform_indices = @transform_2, window_bounds = array<i64: 64, 1>}, {pipeline_mode = #tpu.pipeline_mode<synchronous>, transform_indices = @transform_3, window_bounds = array<i64: 128, 64>}, {pipeline_mode = #tpu.pipeline_mode<synchronous>, transform_indices = @transform_4, window_bounds = array<i64: 128, 1>}, {pipeline_mode = #tpu.pipeline_mode<synchronous>, transform_indices = @transform_5, window_bounds = array<i64: 256, 128>}, {pipeline_mode = #tpu.pipeline_mode<synchronous>, transform_indices = @transform_6, window_bounds = array<i64: 256, 1>}, {transform_indices = @transform_7, window_bounds = array<i64: 1, 256, 128>}]} {
    %c0 = arith.constant 0 : index
    %c0_0 = arith.constant 0 : index
    %c0_1 = arith.constant 0 : index
    %0 = vector.load %arg2[%c0, %c0_0, %c0_1] : memref<1x3x128xf32, #tpu.memory_space<vmem>>, vector<1x3x128xf32>
    %1 = vector.shape_cast %0 : vector<1x3x128xf32> to vector<3x128xf32>
    %c0_2 = arith.constant 0 : index
    %c0_3 = arith.constant 0 : index
    %2 = vector.load %arg3[%c0_2, %c0_3] : memref<64x3xf32, #tpu.memory_space<vmem>>, vector<64x3xf32>
    %3 = vector.extract_strided_slice %2 {offsets = [0, 0], sizes = [64, 1], strides = [1, 1]} : vector<64x3xf32> to vector<64x1xf32>
    %4 = vector.extract_strided_slice %1 {offsets = [0, 0], sizes = [1, 128], strides = [1, 1]} : vector<3x128xf32> to vector<1x128xf32>
    %5 = vector.broadcast %3 : vector<64x1xf32> to vector<64x128xf32>
    %6 = vector.broadcast %4 : vector<1x128xf32> to vector<64x128xf32>
    %7 = arith.mulf %5, %6 : vector<64x128xf32>
    %8 = vector.extract_strided_slice %2 {offsets = [0, 1], sizes = [64, 1], strides = [1, 1]} : vector<64x3xf32> to vector<64x1xf32>
    %9 = vector.extract_strided_slice %1 {offsets = [1, 0], sizes = [1, 128], strides = [1, 1]} : vector<3x128xf32> to vector<1x128xf32>
    %10 = vector.broadcast %8 : vector<64x1xf32> to vector<64x128xf32>
    %11 = vector.broadcast %9 : vector<1x128xf32> to vector<64x128xf32>
    %12 = arith.mulf %10, %11 : vector<64x128xf32>
    %13 = arith.addf %7, %12 : vector<64x128xf32>
    %14 = vector.extract_strided_slice %2 {offsets = [0, 2], sizes = [64, 1], strides = [1, 1]} : vector<64x3xf32> to vector<64x1xf32>
    %15 = vector.extract_strided_slice %1 {offsets = [2, 0], sizes = [1, 128], strides = [1, 1]} : vector<3x128xf32> to vector<1x128xf32>
    %16 = vector.broadcast %14 : vector<64x1xf32> to vector<64x128xf32>
    %17 = vector.broadcast %15 : vector<1x128xf32> to vector<64x128xf32>
    %18 = arith.mulf %16, %17 : vector<64x128xf32>
    %19 = arith.addf %13, %18 : vector<64x128xf32>
    %c0_4 = arith.constant 0 : index
    %c0_5 = arith.constant 0 : index
    %20 = vector.load %arg4[%c0_4, %c0_5] : memref<64x1xf32, #tpu.memory_space<vmem>>, vector<64x1xf32>
    %21 = vector.broadcast %20 : vector<64x1xf32> to vector<64x128xf32>
    %22 = arith.addf %19, %21 : vector<64x128xf32>
    %cst = arith.constant 0.000000e+00 : f32
    %23 = vector.broadcast %cst : f32 to vector<64x128xf32>
    %24 = arith.maximumf %22, %23 : vector<64x128xf32>
    %c0_6 = arith.constant 0 : index
    %c0_7 = arith.constant 0 : index
    %25 = vector.load %arg5[%c0_6, %c0_7] : memref<128x64xbf16, #tpu.memory_space<vmem>>, vector<128x64xbf16>
    %26 = arith.truncf %24 : vector<64x128xf32> to vector<64x128xbf16>
    %cst_8 = arith.constant dense<0.000000e+00> : vector<128x128xf32>
    %27 = tpu.matmul %25, %26, %cst_8 {dimension_numbers = #tpu.dot_dimension_numbers<[1], [0], [0], [1], [0, 0, 1, 1], [], []>} : vector<128x64xbf16>, vector<64x128xbf16>, vector<128x128xf32> -> vector<128x128xf32>
    %c0_9 = arith.constant 0 : index
    %c0_10 = arith.constant 0 : index
    %28 = vector.load %arg6[%c0_9, %c0_10] : memref<128x1xf32, #tpu.memory_space<vmem>>, vector<128x1xf32>
    %29 = vector.broadcast %28 : vector<128x1xf32> to vector<128x128xf32>
    %30 = arith.addf %27, %29 : vector<128x128xf32>
    %cst_11 = arith.constant 0.000000e+00 : f32
    %31 = vector.broadcast %cst_11 : f32 to vector<128x128xf32>
    %32 = arith.maximumf %30, %31 : vector<128x128xf32>
    %c0_12 = arith.constant 0 : index
    %c0_13 = arith.constant 0 : index
    %33 = vector.load %arg7[%c0_12, %c0_13] : memref<256x128xbf16, #tpu.memory_space<vmem>>, vector<256x128xbf16>
    %34 = arith.truncf %32 : vector<128x128xf32> to vector<128x128xbf16>
    %cst_14 = arith.constant dense<0.000000e+00> : vector<256x128xf32>
    %35 = tpu.matmul %33, %34, %cst_14 {dimension_numbers = #tpu.dot_dimension_numbers<[1], [0], [0], [1], [0, 0, 1, 1], [], []>} : vector<256x128xbf16>, vector<128x128xbf16>, vector<256x128xf32> -> vector<256x128xf32>
    %c0_15 = arith.constant 0 : index
    %c0_16 = arith.constant 0 : index
    %36 = vector.load %arg8[%c0_15, %c0_16] : memref<256x1xf32, #tpu.memory_space<vmem>>, vector<256x1xf32>
    %37 = vector.broadcast %36 : vector<256x1xf32> to vector<256x128xf32>
    %38 = arith.addf %35, %37 : vector<256x128xf32>
    %39 = arith.truncf %38 : vector<256x128xf32> to vector<256x128xbf16>
    %c0_17 = arith.constant 0 : index
    %c0_18 = arith.constant 0 : index
    %c0_19 = arith.constant 0 : index
    %40 = vector.load %arg9[%c0_17, %c0_18, %c0_19] : memref<1x256x128xbf16, #tpu.memory_space<vmem>>, vector<1x256x128xbf16>
    %41 = vector.shape_cast %40 : vector<1x256x128xbf16> to vector<256x128xbf16>
    %42 = vector.shape_cast %39 : vector<256x128xbf16> to vector<1x256x128xbf16>
    tpu.vector_store %arg9[%c0_17, %c0_18, %c0_19], %42 {strides = array<i32>} : memref<1x256x128xbf16, #tpu.memory_space<vmem>>, vector<1x256x128xbf16>,
    return
  }
  func.func @transform_0(%arg0: i32, %arg1: i32) -> (i32, i32, i32) {
    %c0_i32 = arith.constant 0 : i32
    %c0_i32_0 = arith.constant 0 : i32
    return %arg0, %c0_i32, %arg1 : i32, i32, i32
  }
  func.func @transform_1(%arg0: i32, %arg1: i32) -> (i32, i32) {
    %c0_i32 = arith.constant 0 : i32
    %c0_i32_0 = arith.constant 0 : i32
    %c0_i32_1 = arith.constant 0 : i32
    return %c0_i32, %c0_i32_0 : i32, i32
  }
  func.func @transform_2(%arg0: i32, %arg1: i32) -> (i32, i32) {
    %c0_i32 = arith.constant 0 : i32
    %c0_i32_0 = arith.constant 0 : i32
    %c0_i32_1 = arith.constant 0 : i32
    return %c0_i32, %c0_i32_0 : i32, i32
  }
  func.func @transform_3(%arg0: i32, %arg1: i32) -> (i32, i32) {
    %c0_i32 = arith.constant 0 : i32
    %c0_i32_0 = arith.constant 0 : i32
    %c0_i32_1 = arith.constant 0 : i32
    return %c0_i32, %c0_i32_0 : i32, i32
  }
  func.func @transform_4(%arg0: i32, %arg1: i32) -> (i32, i32) {
    %c0_i32 = arith.constant 0 : i32
    %c0_i32_0 = arith.constant 0 : i32
    %c0_i32_1 = arith.constant 0 : i32
    return %c0_i32, %c0_i32_0 : i32, i32
  }
  func.func @transform_5(%arg0: i32, %arg1: i32) -> (i32, i32) {
    %c0_i32 = arith.constant 0 : i32
    %c0_i32_0 = arith.constant 0 : i32
    %c0_i32_1 = arith.constant 0 : i32
    return %c0_i32, %c0_i32_0 : i32, i32
  }
  func.func @transform_6(%arg0: i32, %arg1: i32) -> (i32, i32) {
    %c0_i32 = arith.constant 0 : i32
    %c0_i32_0 = arith.constant 0 : i32
    %c0_i32_1 = arith.constant 0 : i32
    return %c0_i32, %c0_i32_0 : i32, i32
  }
  func.func @transform_7(%arg0: i32, %arg1: i32) -> (i32, i32, i32) {
    %c0_i32 = arith.constant 0 : i32
    %c0_i32_0 = arith.constant 0 : i32
    return %arg0, %c0_i32, %arg1 : i32, i32, i32
  }
}

</mosaic_0001>

<bundles_post_ra>
// kernel: tpu_custom_call.1
= control target key start
LH: loop header
LB: loop body
LE: loop exit
PB: predicated region body
PF: predicated region fallthrough
CT: control target
= control target key end

     0   :  { %12 = vsyncpa [#allocation3], 0  ;;  %s2604_s0 = inlined_call_operand.vmem [shape: f32[2,3,128], index: 0, kind: input, shape index: {}]   ;;  %s2605_s1 = inlined_call_operand.vmem [shape: f32[64,3], index: 1, kind: input, shape index: {}]   ;;  %s2606_s2 = inlined_call_operand.vmem [shape: f32[64,1], index: 2, kind: input, shape index: {}]   ;;  %s2607_s3 = inlined_call_operand.vmem [shape: bf16[128,64], index: 3, kind: input, shape index: {}]   ;;  %s2608_s4 = inlined_call_operand.vmem [shape: f32[128,1], index: 4, kind: input, shape index: {}]   ;;  %s2609_s5 = inlined_call_operand.vmem [shape: bf16[256,128], index: 5, kind: input, shape index: {}]   ;;  %s2610_s6 = inlined_call_operand.vmem [shape: f32[256,1], index: 6, kind: input, shape index: {}]   ;;  %s2611_s7 = inlined_call_operand.hbm [shape: bf16[2,256,128], index: 7, kind: output, shape index: {}]  }
   0x1   :  { %14 = vsyncpa [#allocation3 + $0x1], 0  ;;  %s2113_s24 = smov 0   ;;  %s2115_s25 = smov 0  }
   0x2   :  { %s2117_s26 = smov 0   ;;  %s2119_s27 = smov 0  }
   0x3   :  { %s2121_s28 = smov 0   ;;  %s2123_s29 = smov 0  }
   0x4 LB: > { %s1562_s30 = sadd.s32 4294967295, %s2065_s29   ;;  %s1563_s8 = sadd.s32 4294967294, %s2065_s29   ;;  %s2065_s29 = sphi %s2123_s29, %s20_s29   ;;  %s2061_s28 = sphi %s2121_s28, %s2618_s28   ;;  %s2057_s27 = sphi %s2119_s27, %s2617_s27   ;;  %s2053_s26 = sphi %s2117_s26, %s2616_s26   ;;  %s2049_s25 = sphi %s2115_s25, %s2615_s25   ;;  %s2045_s24 = sphi %s2113_s24, %s2614_s24  }
   0x5   : > { %s32_s9 = sadd.s32 1, %s2061_s28  ;;  %s195_s10 = sadd.s32 1, %s2053_s26 }
   0x6   : > { %p34_p0 = scmp.ge.s32.totalorder %s32_s9, 2  ;;  %p205_p1 = scmp.ne.s32.totalorder %s2053_s26, %s2049_s25 }
   0x7   : > { %p206_p2 = scmp.eq.s32.totalorder %s1562_s30, 1  ;;  %p211_p3 = scmp.ne.s32.totalorder %s2049_s25, %s2045_s24 }
   0x8   : > { %s2620_s9 = smov (%p34_p0, %s32_s9), 0  ;;  %p212_p5 = scmp.eq.s32.totalorder %s1563_s8, 1 }
   0x9   : > { %p2153_p4 = por %p206_p2, %p205_p1  ;;  %s190_s12 = ssub.s32 %s2061_s28, %s2620_s9 }
   0xa   : > { %p1566_p6 = scmp.ge.s32.totalorder %s2065_s29, 1  ;;  %p193_p7 = scmp.eq.s32.totalorder %s190_s12, 0 }
   0xb   : > { %p2160_p8 = por %p212_p5, %p211_p3  ;;  %p258_p9 = scmp.lt.s32.totalorder %s2065_s29, 3 }
   0xc   : > { %s2166_s14 = scalar_select %p193_p7, %s2053_s26, %s195_s10  }
   0xd   : > { %p259_p10 = pnand %p1566_p6, %p258_p9 }
   0xe   : > { %p292_p11 = scmp.lt.s32.totalorder (!%p259_p10), %s2057_s27, 1  ;;  %s289_s12 = sand.u32 (!%p259_p10), 1, %s2049_s25  }
   0xf   : > { %262 = sbr.rel (%p259_p10) target bundleno = 751 (0x2ef), region = 48  ;;  %s1567_s15 = sshll.u32 (!%p259_p10), %s289_s12, 7 }
  0x10   : > { %s1670_s17 = sshll.u32 (!%p259_p10), %s2057_s27, 11  ;;  %s2070_s23 = smov (!%p259_p10), [#allocation2]  }
  0x14   : > { %v307_v0 = vld [vmem:[%s2605_s1 + $0x30] sm:$0xff]  ;;  %v2067_v1 = vmov 2   ;;  %v2068_v2 = vmov 1   ;;  %v308_v3 = vld [vmem:[%s2605_s1 + $0x38] sm:$0xff]  ;;  %v305_v4 = vld [vmem:[%s2605_s1 + $0x20] sm:$0xff]  ;;  %v2069_v7 = vmov 0   ;;  %v349_v60 = vlaneseq }
  0x15   : > { %1951 = vset.pattern.permute.xlu0 %v2067_v1  ;;  %1950 = vset.pattern.permute.xlu1 %v2068_v2  ;;  %v304_v5 = vld [vmem:[%s2605_s1 + $0x18] sm:$0xff]  ;;  %v303_v6 = vld [vmem:[%s2605_s1 + $0x10] sm:$0xff]  ;;  %v302_v8 = vld [vmem:[%s2605_s1 + $0x8] sm:$0xff]  ;;  %vm685_vm0 = vcmask 523264   ;;  %s293_s30 = scalar_select %p292_p11, %s2057_s27, 1 }
  0x16   : > { %438 = vperm.xlu0 %1951, %v307_v0   ;;  %386 = vperm.xlu1 %1950, %v307_v0   ;;  %v306_v9 = vld [vmem:[%s2605_s1 + $0x28] sm:$0xff]  ;;  %v471_v10 = vld [vmem:[%s2606_s2 + $0x30] sm:$0xff]  ;;  %v472_v11 = vld [vmem:[%s2606_s2 + $0x38] sm:$0xff]  ;;  %s2559_s27 = scalar_lea.sflag [#allocation3], %s289_s12 }
  0x17   : > { %v301_v12 = vld [vmem:[%s2605_s1] sm:$0xff]  ;;  %v467_v13 = vld [vmem:[%s2606_s2 + $0x10] sm:$0xff]  ;;  %v466_v14 = vld [vmem:[%s2606_s2 + $0x8] sm:$0xff]  ;;  %s1568_s16 = sshll.u32 %s293_s30, 2  ;;  %s1993_s30 = sshll.u32 %s2070_s23, 4  ;;  %s1994_s30 = int_to_ptr.vmem [resolvable:$false] %s1993_s30 }
  0x18   : > { %v564_v15 = vld [vmem:[%s2608_s4 + $0x78] sm:$0xff]  ;;  %v562_v16 = vld [vmem:[%s2608_s4 + $0x68] sm:$0xff]  ;;  %v469_v17 = vld [vmem:[%s2606_s2 + $0x20] sm:$0xff]  ;;  %s298_s21 = scalar_lea.vmem %s2604_s0, %s1568_s16  ;;  %s2524_s16 = scalar_lea.vmem [#allocation2], %s1567_s15 }
  0x19   : > { %v560_v18 = vld [vmem:[%s2608_s4 + $0x58] sm:$0xff]  ;;  %v470_v19 = vld [vmem:[%s2606_s2 + $0x28] sm:$0xff]  ;;  %v465_v28 = vld [vmem:[%s2606_s2] sm:$0xff]  ;;  %s1487_s18 = sshll.u32 %s2524_s16, 4  ;;  %s1995_s8 = scalar_lea.vmem %s1994_s30, 4096  ;;  %s2553_s18 = int_to_ptr.vmem [resolvable:$true] %s1487_s18 }
  0x1a   : > { %390 = vperm.xlu1 %1950, %v308_v3   ;;  %430 = vperm.xlu0 %1951, %v305_v4   ;;  %v558_v20 = vld [vmem:[%s2608_s4 + $0x48] sm:$0xff]  ;;  %v556_v21 = vld [vmem:[%s2608_s4 + $0x38] sm:$0xff]  ;;  %v563_v30 = vld [vmem:[%s2608_s4 + $0x70] sm:$0xff]  ;;  %s1989_s22 = scalar_lea.vmem %s2553_s18, 2048  ;;  %p1996_p1 = scmp.lt.s32.totalorder %s2553_s18, %s1994_s30 }
  0x1b   : > { %v554_v22 = vld [vmem:[%s2608_s4 + $0x28] sm:$0xff]  ;;  %v552_v23 = vld [vmem:[%s2608_s4 + $0x18] sm:$0xff]  ;;  %v1965_v31 = vld [vmem:[%s2607_s3] sm:$0xff]   ;;  %p1990_p12 = scmp.ne.s32.totalorder %s2553_s18, %s1989_s22  ;;  %p1997_p2 = scmp.lt.s32.totalorder %s1995_s8, %s1989_s22 }
  0x1c   : > { %v550_v24 = vld [vmem:[%s2608_s4 + $0x8] sm:$0xff]  ;;  %v468_v26 = vld [vmem:[%s2606_s2 + $0x18] sm:$0xff]  ;;  %v561_v33 = vld [vmem:[%s2608_s4 + $0x60] sm:$0xff]  ;;  %1810 = vmatprep.mubr.msk.bf16.mxu0 %vm685_vm0, %v1965_v31 }
  0x1d   : > { %v864_v25 = vld [vmem:[%s2610_s6 + $0x8] sm:$0xff]  ;;  %v866_v27 = vld [vmem:[%s2610_s6 + $0x18] sm:$0xff]  ;;  %v559_v35 = vld [vmem:[%s2608_s4 + $0x50] sm:$0xff]  ;;  %p1991_p13 = pnand %p1990_p12, %p2153_p4  ;;  %p1998_p3 = por %p1997_p2, %p1996_p1 }
  0x1e   : > { %1952 = vset.pattern.permute.xlu1 %v2067_v1  ;;  %426 = vperm.xlu0 %1951, %v304_v5   ;;  %v868_v29 = vld [vmem:[%s2610_s6 + $0x28] sm:$0xff]  ;;  %v870_v32 = vld [vmem:[%s2610_s6 + $0x38] sm:$0xff]  ;;  %v557_v37 = vld [vmem:[%s2608_s4 + $0x40] sm:$0xff] }
  0x1f   : > { %442 = vperm.xlu1 %1952, %v308_v3   ;;  %v872_v34 = vld [vmem:[%s2610_s6 + $0x48] sm:$0xff]  ;;  %v874_v36 = vld [vmem:[%s2610_s6 + $0x58] sm:$0xff]  ;;  %v555_v39 = vld [vmem:[%s2608_s4 + $0x30] sm:$0xff]  ;;  %p1992_p0 = pneg %p1991_p13 }
  0x20   : > { %v876_v38 = vld [vmem:[%s2610_s6 + $0x68] sm:$0xff]  ;;  %v878_v40 = vld [vmem:[%s2610_s6 + $0x78] sm:$0xff]  ;;  %v553_v41 = vld [vmem:[%s2608_s4 + $0x20] sm:$0xff] }
  0x21   : > { %v880_v42 = vld [vmem:[%s2610_s6 + $0x88] sm:$0xff]  ;;  %v551_v43 = vld [vmem:[%s2608_s4 + $0x10] sm:$0xff]  ;;  %v882_v44 = vld [vmem:[%s2610_s6 + $0x98] sm:$0xff]  ;;  %p1999_p5 = pnand %p1998_p3, %p1992_p0 }
  0x22   : > { %1959 = vset.pattern.permute.xlu0 %v2068_v2  ;;  %v549_v45 = vld [vmem:[%s2608_s4] sm:$0xff]  ;;  %v884_v46 = vld [vmem:[%s2610_s6 + $0xa8] sm:$0xff]  ;;  %v886_v50 = vld [vmem:[%s2610_s6 + $0xb8] sm:$0xff] }
  0x23   : > { %1953 = vset.pattern.permute.xlu1 %v2069_v7  ;;  %370 = vperm.xlu0 %1959, %v303_v6   ;;  %v863_v47 = vld [vmem:[%s2610_s6] sm:$0xff]  ;;  %v865_v51 = vld [vmem:[%s2610_s6 + $0x10] sm:$0xff]  ;;  %v888_v54 = vld [vmem:[%s2610_s6 + $0xc8] sm:$0xff] }
  0x24   : > { %331 = vperm.xlu1 %1953, %v305_v4   ;;  %v867_v55 = vld [vmem:[%s2610_s6 + $0x20] sm:$0xff]  ;;  %v890_v57 = vld [vmem:[%s2610_s6 + $0xd8] sm:$0xff]  ;;  %v869_v59 = vld [vmem:[%s2610_s6 + $0x30] sm:$0xff] }
  0x25   : > { %v892_v61 = vld [vmem:[%s2610_s6 + $0xe8] sm:$0xff]  ;;  %v871_v63 = vld [vmem:[%s2610_s6 + $0x40] sm:$0xff] }
  0x27   : > { %366 = vperm.xlu0 %1959, %v302_v8  }
  0x28   : > { %1954 = vset.pattern.permute.xlu1 %v2068_v2 }
  0x29   : > { %378 = vperm.xlu1 %1954, %v305_v4   ;;  %v873_v4 = vld [vmem:[%s2610_s6 + $0x50] sm:$0xff] }
  0x2b   : > { %1962 = vset.pattern.permute.xlu0 %v2069_v7 }
  0x2c   : > { %341 = vperm.xlu0 %1962, %v307_v0   ;;  %v350_v0 = vshrl.u32 %v349_v60, 7  ;;  %v893_v60 = vld [vmem:[%s2610_s6 + $0xf0] sm:$0xff] }
  0x2d   : > { %382 = vperm.xlu1 %1954, %v306_v9  }
  0x30   : > { %346 = vperm.xlu0 %1962, %v308_v3  }
  0x31   : > { %1955 = vset.pattern.permute.xlu1 %v2067_v1 }
  0x32   : > { %434 = vperm.xlu1 %1955, %v306_v9  }
  0x34   : > { %336 = vperm.xlu0 %1962, %v306_v9   ;;  %v875_v9 = vld [vmem:[%s2610_s6 + $0x60] sm:$0xff] }
  0x36   : > { %1956 = vset.pattern.permute.xlu1 %v2069_v7 }
  0x37   : > { %505 = vperm.xlu1 %1956, %v471_v10  }
  0x38   : > { %510 = vperm.xlu0 %1962, %v472_v11   ;;  %v447_v11 = vsub.s32 2, %v350_v0 }
  0x3b   : > { %321 = vperm.xlu1 %1956, %v303_v6  }
  0x3c   : > { %311 = vperm.xlu0 %1962, %v301_v12  }
  0x3f   : > { %326 = vperm.xlu1 %1956, %v304_v5  }
  0x40   : > { %485 = vperm.xlu0 %1962, %v467_v13  }
  0x43   : > { %1957 = vset.pattern.permute.xlu1 %v2068_v2 }
  0x44   : > { %374 = vperm.xlu1 %1957, %v304_v5   ;;  %480 = vperm.xlu0 %1962, %v466_v14   ;;  %v395_v5 = vsub.s32 1, %v350_v0 }
  0x48   : > { %1958 = vset.pattern.permute.xlu1 %v2067_v1  ;;  %642 = vperm.xlu0 %1962, %v564_v15  }
  0x49   : > { %422 = vperm.xlu1 %1958, %v303_v6   ;;  %v351_v6 = vsub.s32 0, %v350_v0 }
  0x4c   : > { %632 = vperm.xlu0 %1962, %v562_v16   ;;  %v877_v16 = vld [vmem:[%s2610_s6 + $0x70] sm:$0xff] }
  0x4d   : > { %1960 = vset.pattern.permute.xlu1 %v2069_v7 }
  0x4e   : > { %495 = vperm.xlu1 %1960, %v469_v17  }
  0x50   : > { %622 = vperm.xlu0 %1962, %v560_v18  }
  0x52   : > { %500 = vperm.xlu1 %1960, %v470_v19  }
  0x54   : > { %612 = vperm.xlu0 %1962, %v558_v20  }
  0x56   : > { %316 = vperm.xlu1 %1960, %v302_v8  }
  0x58   : > { %602 = vperm.xlu0 %1962, %v556_v21  }
  0x5a   : > { %1961 = vset.pattern.permute.xlu1 %v2068_v2  ;;  %v894_v2 = vld [vmem:[%s2610_s6 + $0xf8] sm:$0xff] }
  0x5b   : > { %362 = vperm.xlu1 %1961, %v301_v12  }
  0x5c   : > { %592 = vperm.xlu0 %1962, %v554_v22  }
  0x5f   : > { %1963 = vset.pattern.permute.xlu1 %v2067_v1 }
  0x60   : > { %582 = vperm.xlu0 %1962, %v552_v23   ;;  %414 = vperm.xlu1 %1963, %v301_v12  }
  0x64   : > { %572 = vperm.xlu0 %1962, %v550_v24   ;;  %418 = vperm.xlu1 %1963, %v302_v8  }
  0x68   : > { %902 = vperm.xlu0 %1962, %v864_v25   ;;  %1964 = vset.pattern.permute.xlu1 %v2069_v7  ;;  %v300_v7 = vld [vmem:[%s298_s21] sm:$0x7]  ;;  %s2551_s21 = scalar_lea.hbm %s2611_s7, %s1670_s17 }
  0x69   : > { %490 = vperm.xlu1 %1964, %v468_v26   ;;  %v2360_v10 = vrot.slane %v300_v7, %v395_v5  ;;  %v2362_v12 = vrot.slane %v300_v7, %v351_v6  ;;  %v2369_v18 = vrot.slane %v300_v7, %v447_v11  ;;  %v879_v26 = vld [vmem:[%s2610_s6 + $0x80] sm:$0xff] }
  0x6c   : > { %912 = vperm.xlu0 %1962, %v866_v27  }
  0x6d   : > { %475 = vperm.xlu1 %1964, %v465_v28  }
  0x70   : > { %922 = vperm.xlu0 %1962, %v868_v29  }
  0x71   : > { %637 = vperm.xlu1 %1964, %v563_v30  }
  0x74   : > { %932 = vperm.xlu0 %1962, %v870_v32   ;;  %v881_v32 = vld [vmem:[%s2610_s6 + $0x90] sm:$0xff] }
  0x75   : > { %627 = vperm.xlu1 %1964, %v561_v33  }
  0x78   : > { %942 = vperm.xlu0 %1962, %v872_v34  }
  0x79   : > { %617 = vperm.xlu1 %1964, %v559_v35  }
  0x7c   : > { %952 = vperm.xlu0 %1962, %v874_v36  }
  0x7d   : > { %607 = vperm.xlu1 %1964, %v557_v37  }
  0x80   : > { %962 = vperm.xlu0 %1962, %v876_v38  }
  0x81   : > { %597 = vperm.xlu1 %1964, %v555_v39   ;;  %v883_v39 = vld [vmem:[%s2610_s6 + $0xa0] sm:$0xff] }
  0x84   : > { %972 = vperm.xlu0 %1962, %v878_v40  }
  0x85   : > { %587 = vperm.xlu1 %1964, %v553_v41  }
  0x88   : > { %982 = vperm.xlu0 %1962, %v880_v42   ;;  %v885_v42 = vld [vmem:[%s2610_s6 + $0xb0] sm:$0xff] }
  0x89   : > { %577 = vperm.xlu1 %1964, %v551_v43   ;;  %v887_v43 = vld [vmem:[%s2610_s6 + $0xc0] sm:$0xff] }
  0x8c   : > { %992 = vperm.xlu0 %1962, %v882_v44  }
  0x8d   : > { %567 = vperm.xlu1 %1964, %v549_v45  }
  0x90   : > { %1002 = vperm.xlu0 %1962, %v884_v46   ;;  %v889_v46 = vld [vmem:[%s2610_s6 + $0xd0] sm:$0xff] }
  0x91   : > { %v387_v48 = vpop.permute.xlu1 %386  ;;  %897 = vperm.xlu1 %1964, %v863_v47   ;;  %v439_v49 = vpop.permute.xlu0 %438 }
  0x92   : > { %v403_v17 = vmul.f32 %v2360_v10, %v387_v48  ;;  %v455_v22 = vmul.f32 %v2369_v18, %v439_v49 }
  0x94   : > { %1012 = vperm.xlu0 %1962, %v886_v50  }
  0x95   : > { %v391_v52 = vpop.permute.xlu1 %390  ;;  %907 = vperm.xlu1 %1964, %v865_v51   ;;  %v2320_v53 = vpop.permute.xlu0 %430 }
  0x96   : > { %v404_v20 = vmul.f32 %v2360_v10, %v391_v52  ;;  %v453_v50 = vmul.f32 %v2369_v18, %v2320_v53 }
  0x98   : > { %1022 = vperm.xlu0 %1962, %v888_v54   ;;  %v891_v54 = vld [vmem:[%s2610_s6 + $0xe0] sm:$0xff] }
  0x99   : > { %917 = vperm.xlu1 %1964, %v867_v55   ;;  %v2329_v56 = vpop.permute.xlu0 %426 }
  0x9a   : > { %v443_v58 = vpop.permute.xlu1 %442 }
  0x9b   : > { %v456_v28 = vmul.f32 %v2369_v18, %v443_v58 }
  0x9c   : > { %1032 = vperm.xlu0 %1962, %v890_v57  }
  0x9d   : > { %927 = vperm.xlu1 %1964, %v869_v59  }
  0x9e   : > { %v2341_v62 = vpop.permute.xlu0 %370 }
  0x9f   : > { %v332_v1 = vpop.permute.xlu1 %331  ;;  %v399_v7 = vmul.f32 %v2360_v10, %v2341_v62 }
  0xa0   : > { %1042 = vperm.xlu0 %1962, %v892_v61   ;;  %v357_v47 = vmul.f32 %v2362_v12, %v332_v1 }
  0xa1   : > { %937 = vperm.xlu1 %1964, %v871_v63  }
  0xa2   : > { %v2352_v3 = vpop.permute.xlu0 %366 }
  0xa4   : > { %v379_v8 = vpop.permute.xlu1 %378  ;;  %1052 = vperm.xlu0 %1962, %v894_v2  }
  0xa5   : > { %947 = vperm.xlu1 %1964, %v873_v4   ;;  %v401_v45 = vmul.f32 %v2360_v10, %v379_v8 }
  0xa7   : > { %v342_v13 = vpop.permute.xlu0 %341  ;;  %v409_v51 = vadd.f32 %v401_v45, %v357_v47  ;;  %v1970_v45 = vld [vmem:[%s2607_s3 + $0x28] sm:$0xff]   ;;  %v1972_v47 = vld [vmem:[%s2607_s3 + $0x38] sm:$0xff]  }
  0xa8   : > { %v383_v14 = vpop.permute.xlu1 %382  ;;  %v359_v15 = vmul.f32 %v2362_v12, %v342_v13 }
  0xa9   : > { %957 = vperm.xlu1 %1964, %v875_v9   ;;  %v402_v52 = vmul.f32 %v2360_v10, %v383_v14  ;;  %v461_v59 = vadd.f32 %v453_v50, %v409_v51 }
  0xaa   : > { %v411_v23 = vadd.f32 %v403_v17, %v359_v15 }
  0xab   : > { %v347_v19 = vpop.permute.xlu0 %346 }
  0xac   : > { %v360_v21 = vmul.f32 %v2362_v12, %v347_v19  ;;  %v463_v29 = vadd.f32 %v455_v22, %v411_v23  ;;  %v398_v19 = vmul.f32 %v2360_v10, %v2352_v3 }
  0xad   : > { %v435_v24 = vpop.permute.xlu1 %434  ;;  %967 = vperm.xlu1 %1964, %v877_v16  }
  0xae   : > { %v412_v25 = vadd.f32 %v404_v20, %v360_v21  ;;  %v454_v58 = vmul.f32 %v2369_v18, %v435_v24  ;;  %v452_v24 = vmul.f32 %v2369_v18, %v2329_v56 }
  0xaf   : > { %v337_v27 = vpop.permute.xlu0 %336 }
  0xb0   : > { %v464_v31 = vadd.f32 %v456_v28, %v412_v25  ;;  %v358_v48 = vmul.f32 %v2362_v12, %v337_v27 }
  0xb1   : > { %977 = vperm.xlu1 %1964, %v879_v26  }
  0xb2   : > { %v506_v30 = vpop.permute.xlu1 %505  ;;  %v410_v55 = vadd.f32 %v402_v52, %v358_v48  ;;  %v1973_v48 = vld [vmem:[%s2609_s5] sm:$0xff]  }
  0xb3   : > { %v519_v33 = vadd.f32 %v506_v30, %v463_v29  ;;  %v511_v34 = vpop.permute.xlu0 %510 }
  0xb4   : > { %v520_v35 = vadd.f32 %v511_v34, %v464_v31  ;;  %v462_v63 = vadd.f32 %v454_v58, %v410_v55 }
  0xb5   : > { %v527_v36 = vmax.f32 %v519_v33, 0.0  ;;  %987 = vperm.xlu1 %1964, %v881_v32  }
  0xb6   : > { %v528_v37 = vmax.f32 %v520_v35, 0.0  ;;  %v322_v38 = vpop.permute.xlu1 %321 }
  0xb7   : > { %v355_v8 = vmul.f32 %v2362_v12, %v322_v38  ;;  %v312_v9 = vpop.permute.xlu0 %311 }
  0xb8   : > { %v548_v40 = vpack.c.bf16 %v528_v37, %v527_v36  ;;  %v353_v27 = vmul.f32 %v2362_v12, %v312_v9 }
  0xb9   : > { %997 = vperm.xlu1 %1964, %v883_v39   ;;  %v407_v15 = vadd.f32 %v399_v7, %v355_v8 }
  0xba   : > { %v327_v41 = vpop.permute.xlu1 %326  ;;  %1802 = vmatprep.subr.bf16.mxu0 %v548_v40 }
  0xbb   : > { %1803 = vmatpush3.bf16.msra.mxu0 %v548_v40  ;;  %v356_v16 = vmul.f32 %v2362_v12, %v327_v41  ;;  %v486_v62 = vpop.permute.xlu0 %485 }
  0xbd   : > { %1007 = vperm.xlu1 %1964, %v885_v42   ;;  %v1967_v42 = vld [vmem:[%s2607_s3 + $0x10] sm:$0xff]  }
  0xbf   : > { %v375_v44 = vpop.permute.xlu1 %374  ;;  %v481_v34 = vpop.permute.xlu0 %480 }
  0xc0   : > { %v400_v11 = vmul.f32 %v2360_v10, %v375_v44  ;;  %v1969_v44 = vld [vmem:[%s2607_s3 + $0x20] sm:$0xff]  }
  0xc1   : > { %1017 = vperm.xlu1 %1964, %v887_v43   ;;  %v1968_v43 = vld [vmem:[%s2607_s3 + $0x18] sm:$0xff]  }
  0xc2   : > { %v408_v20 = vadd.f32 %v400_v11, %v356_v16 }
  0xc3   : > { %v643_v55 = vpop.permute.xlu0 %642 }
  0xc4   : > { %v423_v49 = vpop.permute.xlu1 %422  ;;  %v460_v31 = vadd.f32 %v452_v24, %v408_v20 }
  0xc5   : > { %1027 = vperm.xlu1 %1964, %v889_v46   ;;  %v451_v13 = vmul.f32 %v2369_v18, %v423_v49  ;;  %v1971_v46 = vld [vmem:[%s2607_s3 + $0x30] sm:$0xff]  }
  0xc6   : > { %v1974_v49 = vld [vmem:[%s2609_s5 + $0x30] sm:$0xff]  }
  0xc7   : > { %v459_v21 = vadd.f32 %v451_v13, %v407_v15  ;;  %1854 = vmatprep.mubr.bf16.mxu1 %v1974_v49 }
  0xc9   : > { %v496_v57 = vpop.permute.xlu1 %495  ;;  %1037 = vperm.xlu1 %1964, %v891_v54   ;;  %v515_v28 = vadd.f32 %v486_v62, %v459_v21 }
  0xca   : > { %v517_v61 = vadd.f32 %v496_v57, %v461_v59 }
  0xcb   : > { %v523_v36 = vmax.f32 %v515_v28, 0.0 }
  0xcc   : > { %v525_v1 = vmax.f32 %v517_v61, 0.0  ;;  %v633_v61 = vpop.permute.xlu0 %632 }
  0xcd   : > { %v501_v53 = vpop.permute.xlu1 %500  ;;  %1047 = vperm.xlu1 %1964, %v893_v60  }
  0xce   : > { %v518_v0 = vadd.f32 %v501_v53, %v462_v63 }
  0xd0   : > { %v526_v2 = vmax.f32 %v518_v0, 0.0 }
  0xd1   : > { %v317_v4 = vpop.permute.xlu1 %316 }
  0xd2   : > { %v547_v5 = vpack.c.bf16 %v526_v2, %v525_v1  ;;  %v354_v17 = vmul.f32 %v2362_v12, %v317_v4  ;;  %v623_v2 = vpop.permute.xlu0 %622 }
  0xd4   : > { %1804 = vmatprep.subr.bf16.mxu0 %v547_v5  ;;  %v406_v25 = vadd.f32 %v398_v19, %v354_v17 }
  0xd5   : > { %1805 = vmatpush3.bf16.msra.mxu0 %v547_v5 }
  0xd6   : > { %v363_v6 = vpop.permute.xlu1 %362  ;;  %v613_v8 = vpop.permute.xlu0 %612 }
  0xd7   : > { %v397_v26 = vmul.f32 %v2360_v10, %v363_v6 }
  0xd9   : > { %v405_v32 = vadd.f32 %v397_v26, %v353_v27 }
  0xda   : > { %v603_v62 = vpop.permute.xlu0 %602 }
  0xdb   : > { %v415_v14 = vpop.permute.xlu1 %414 }
  0xdc   : > { %v449_v29 = vmul.f32 %v2369_v18, %v415_v14 }
  0xde   : > { %v457_v38 = vadd.f32 %v449_v29, %v405_v32  ;;  %v593_v32 = vpop.permute.xlu0 %592 }
  0xdf   : > { %v419_v22 = vpop.permute.xlu1 %418 }
  0xe0   : > { %v450_v23 = vmul.f32 %v2369_v18, %v419_v22  ;;  %v1966_v18 = vld [vmem:[%s2607_s3 + $0x8] sm:$0xff]  }
  0xe2   : > { %v458_v30 = vadd.f32 %v450_v23, %v406_v25 }
  0xe4   : > { %v491_v3 = vpop.permute.xlu1 %490  ;;  %v514_v35 = vadd.f32 %v481_v34, %v458_v30 }
  0xe5   : > { %v516_v33 = vadd.f32 %v491_v3, %v460_v31 }
  0xe6   : > { %v522_v10 = vmax.f32 %v514_v35, 0.0 }
  0xe7   : > { %v524_v37 = vmax.f32 %v516_v33, 0.0 }
  0xe8   : > { %v476_v39 = vpop.permute.xlu1 %475 }
  0xe9   : > { %v546_v56 = vpack.c.bf16 %v524_v37, %v523_v36  ;;  %v513_v40 = vadd.f32 %v476_v39, %v457_v38 }
  0xeb   : > { %v521_v41 = vmax.f32 %v513_v40, 0.0  ;;  %1806 = vmatprep.subr.bf16.mxu0 %v546_v56 }
  0xec   : > { %1807 = vmatpush3.bf16.msra.mxu0 %v546_v56  ;;  %v638_v58 = vpop.permute.xlu1 %637 }
  0xed   : > { %v545_v12 = vpack.c.bf16 %v522_v10, %v521_v41  ;;  %v583_v41 = vpop.permute.xlu0 %582 }
  0xef   : > { %1808 = vmatprep.subr.bf16.mxu0 %v545_v12 }
  0xf0   : > { %1809 = vmatpush3.bf16.msra.mxu0 %v545_v12  ;;  %v628_v53 = vpop.permute.xlu1 %627 }
  0xf3   : > { %1811 = vmatmul.mubr.msk.bf16.vlgmr.msra.gmra.mxu0 %vm685_vm0, %v1966_v18 }
  0xf4   : > { %1814 = vmatprep.mubr.msk.bf16.mxu0 %vm685_vm0, %v1967_v42  ;;  %v618_v5 = vpop.permute.xlu1 %617 }
  0xf8   : > { %v608_v13 = vpop.permute.xlu1 %607 }
  0xfb   : > { %1815 = vmatmul.mubr.msk.bf16.gmra.mxu0 %vm685_vm0, %v1968_v43 }
  0xfc   : > { %1818 = vmatprep.mubr.msk.bf16.mxu0 %vm685_vm0, %v1969_v44  ;;  %v598_v27 = vpop.permute.xlu1 %597 }
 0x100   : > { %v588_v36 = vpop.permute.xlu1 %587 }
 0x103   : > { %1819 = vmatmul.mubr.msk.bf16.gmra.mxu0 %vm685_vm0, %v1970_v45 }
 0x104   : > { %1822 = vmatprep.mubr.msk.bf16.mxu0 %vm685_vm0, %v1971_v46  ;;  %v578_v18 = vpop.permute.xlu1 %577 }
 0x10b   : > { %1823 = vmatmul.mubr.msk.bf16.gmra.mxu0 %vm685_vm0, %v1972_v47  ;;  %v573_v47 = vpop.permute.xlu0 %572 }
 0x10c   : > { %1842 = vmatprep.mubr.bf16.mxu0 %v1973_v48 }
 0x1b3   : > { %v2455_v50 = vpop.f32.mrf.mxu0 }
 0x1b4   : > { %v753_v45 = vadd.f32 %v2455_v50, %v578_v18 }
 0x1b5   : > { %v2457_v51 = vpop.f32.mrf.mxu0 }
 0x1b7   : > { %v2459_v52 = vpop.f32.mrf.mxu0 }
 0x1b8   : > { %v756_v42 = vadd.f32 %v2459_v52, %v583_v41 }
 0x1b9   : > { %v2461_v54 = vpop.f32.mrf.mxu0 }
 0x1ba   : > { %v810_v48 = vmax.f32 %v756_v42, 0.0  ;;  %v748_v49 = vadd.f32 %v2461_v54, %v573_v47  ;;  %v1975_v54 = vld [vmem:[%s2609_s5 + $0x8] sm:$0xff]  }
 0x1bb   : > { %v1816_v57 = vpop.f32.mrf.mxu0 }
 0x1bc   : > { %v769_v37 = vadd.f32 %v1816_v57, %v598_v27  ;;  %v568_v57 = vpop.permute.xlu1 %567 }
 0x1bd   : > { %v760_v59 = vpop.f32.mrf.mxu0  ;;  %v745_v52 = vadd.f32 %v2457_v51, %v568_v57  ;;  %v1976_v51 = vld [vmem:[%s2609_s5 + $0x38] sm:$0xff]  }
 0x1be   : > { %v813_v10 = vmax.f32 %v769_v37, 0.0  ;;  %v761_v12 = vadd.f32 %v760_v59, %v588_v36 }
 0x1bf   : > { %v1817_v60 = vpop.f32.mrf.mxu0  ;;  %v807_v50 = vmax.f32 %v745_v52, 0.0 }
 0x1c0   : > { %v772_v33 = vadd.f32 %v1817_v60, %v603_v62  ;;  %v811_v46 = vmax.f32 %v761_v12, 0.0  ;;  %v808_v60 = vmax.f32 %v748_v49, 0.0 }
 0x1c1   : > { %v763_v63 = vpop.f32.mrf.mxu0 }
 0x1c2   : > { %v814_v39 = vmax.f32 %v772_v33, 0.0  ;;  %v764_v56 = vadd.f32 %v763_v63, %v593_v32  ;;  %v1977_v63 = vld [vmem:[%s2609_s5 + $0x10] sm:$0xff]  }
 0x1c3   : > { %v1820_v0 = vpop.f32.mrf.mxu0 }
 0x1c4   : > { %v785_v23 = vadd.f32 %v1820_v0, %v618_v5  ;;  %v858_v43 = vpack.c.bf16 %v814_v39, %v813_v10  ;;  %v812_v44 = vmax.f32 %v764_v56, 0.0  ;;  %v1979_v0 = vld [vmem:[%s2609_s5 + $0x18] sm:$0xff]   ;;  %v1983_v5 = vld [vmem:[%s2609_s5 + $0x28] sm:$0xff]  }
 0x1c5   : > { %v776_v1 = vpop.f32.mrf.mxu0 }
 0x1c6   : > { %v817_v31 = vmax.f32 %v785_v23, 0.0  ;;  %v777_v3 = vadd.f32 %v776_v1, %v608_v13  ;;  %v1980_v1 = vld [vmem:[%s2609_s5 + $0x48] sm:$0xff]   ;;  %v903_v13 = vpop.permute.xlu0 %902 }
 0x1c7   : > { %v1821_v4 = vpop.f32.mrf.mxu0 }
 0x1c8   : > { %v788_v19 = vadd.f32 %v1821_v4, %v623_v2  ;;  %v815_v38 = vmax.f32 %v777_v3, 0.0  ;;  %v1981_v2 = vld [vmem:[%s2609_s5 + $0x20] sm:$0xff]   ;;  %v1982_v4 = vld [vmem:[%s2609_s5 + $0x50] sm:$0xff]  }
 0x1c9   : > { %v779_v6 = vpop.f32.mrf.mxu0 }
 0x1ca   : > { %v818_v28 = vmax.f32 %v788_v19, 0.0  ;;  %v780_v29 = vadd.f32 %v779_v6, %v613_v8  ;;  %v1984_v6 = vld [vmem:[%s2609_s5 + $0x58] sm:$0xff]   ;;  %v1986_v8 = vld [vmem:[%s2609_s5 + $0x68] sm:$0xff]  }
 0x1cb   : > { %v1824_v7 = vpop.f32.mrf.mxu0 }
 0x1cc   : > { %v801_v11 = vadd.f32 %v1824_v7, %v638_v58  ;;  %v860_v34 = vpack.c.bf16 %v818_v28, %v817_v31  ;;  %v816_v35 = vmax.f32 %v780_v29, 0.0  ;;  %v809_v58 = vmax.f32 %v753_v45, 0.0  ;;  %v1985_v7 = vld [vmem:[%s2609_s5 + $0x60] sm:$0xff]  }
 0x1cd   : > { %v792_v9 = vpop.f32.mrf.mxu0 }
 0x1ce   : > { %v793_v15 = vadd.f32 %v792_v9, %v628_v53  ;;  %v821_v20 = vmax.f32 %v801_v11, 0.0  ;;  %v859_v40 = vpack.c.bf16 %v816_v35, %v815_v38  ;;  %v856_v59 = vpack.c.bf16 %v810_v48, %v809_v58  ;;  %v1978_v53 = vld [vmem:[%s2609_s5 + $0x40] sm:$0xff]   ;;  %v1987_v9 = vld [vmem:[%s2609_s5 + $0x70] sm:$0xff]   ;;  %v1988_v11 = vld [vmem:[%s2609_s5 + $0x78] sm:$0xff]  }
 0x1cf   : > { %v1825_v14 = vpop.f32.mrf.mxu0 }
 0x1d0   : > { %v804_v16 = vadd.f32 %v1825_v14, %v643_v55  ;;  %v819_v24 = vmax.f32 %v793_v15, 0.0  ;;  %v857_v55 = vpack.c.bf16 %v812_v44, %v811_v46  ;;  %v898_v14 = vpop.permute.xlu1 %897  ;;  %v913_v15 = vpop.permute.xlu0 %912 }
 0x1d1   : > { %v795_v17 = vpop.f32.mrf.mxu0 }
 0x1d2   : > { %v822_v21 = vmax.f32 %v804_v16, 0.0  ;;  %v796_v22 = vadd.f32 %v795_v17, %v633_v61  ;;  %v855_v61 = vpack.c.bf16 %v808_v60, %v807_v50 }
 0x1d4   : > { %v862_v25 = vpack.c.bf16 %v822_v21, %v821_v20  ;;  %v820_v26 = vmax.f32 %v796_v22, 0.0  ;;  %v908_v16 = vpop.permute.xlu1 %907  ;;  %v2509_v17 = vpop.permute.xlu0 %922 }
 0x1d6   : > { %v861_v30 = vpack.c.bf16 %v820_v26, %v819_v24  ;;  %1826 = vmatprep.subr.bf16.mxu0 %v862_v25  ;;  %1874 = vmatprep.subr.bf16.mxu1 %v862_v25 }
 0x1d7   : > { %1827 = vmatpush3.bf16.msra.mxu0 %v862_v25  ;;  %1882 = vmatpush3.bf16.msra.mxu1 %v862_v25 }
 0x1d8   : > { %1828 = vmatprep.subr.bf16.mxu0 %v861_v30  ;;  %1875 = vmatprep.subr.bf16.mxu1 %v861_v30  ;;  %v918_v19 = vpop.permute.xlu1 %917  ;;  %v933_v20 = vpop.permute.xlu0 %932 }
 0x1db   : > { %1829 = vmatpush3.bf16.msra.mxu0 %v861_v30  ;;  %1883 = vmatpush3.bf16.msra.mxu1 %v861_v30 }
 0x1dc   : > { %1830 = vmatprep.subr.bf16.mxu0 %v860_v34  ;;  %1876 = vmatprep.subr.bf16.mxu1 %v860_v34  ;;  %v928_v21 = vpop.permute.xlu1 %927  ;;  %v2511_v22 = vpop.permute.xlu0 %942 }
 0x1df   : > { %1831 = vmatpush3.bf16.msra.mxu0 %v860_v34  ;;  %1884 = vmatpush3.bf16.msra.mxu1 %v860_v34 }
 0x1e0   : > { %1832 = vmatprep.subr.bf16.mxu0 %v859_v40  ;;  %1877 = vmatprep.subr.bf16.mxu1 %v859_v40  ;;  %v2513_v62 = vpop.permute.xlu1 %937  ;;  %v2515_v23 = vpop.permute.xlu0 %952 }
 0x1e3   : > { %1833 = vmatpush3.bf16.msra.mxu0 %v859_v40  ;;  %1885 = vmatpush3.bf16.msra.mxu1 %v859_v40 }
 0x1e4   : > { %1834 = vmatprep.subr.bf16.mxu0 %v858_v43  ;;  %1878 = vmatprep.subr.bf16.mxu1 %v858_v43  ;;  %v2517_v24 = vpop.permute.xlu1 %947  ;;  %v963_v25 = vpop.permute.xlu0 %962 }
 0x1e7   : > { %1835 = vmatpush3.bf16.msra.mxu0 %v858_v43  ;;  %1886 = vmatpush3.bf16.msra.mxu1 %v858_v43 }
 0x1e8   : > { %1836 = vmatprep.subr.bf16.mxu0 %v857_v55  ;;  %1879 = vmatprep.subr.bf16.mxu1 %v857_v55  ;;  %v958_v26 = vpop.permute.xlu1 %957  ;;  %v973_v27 = vpop.permute.xlu0 %972 }
 0x1eb   : > { %1837 = vmatpush3.bf16.msra.mxu0 %v857_v55  ;;  %1887 = vmatpush3.bf16.msra.mxu1 %v857_v55 }
 0x1ec   : > { %1838 = vmatprep.subr.bf16.mxu0 %v856_v59  ;;  %1880 = vmatprep.subr.bf16.mxu1 %v856_v59  ;;  %v968_v28 = vpop.permute.xlu1 %967  ;;  %v983_v29 = vpop.permute.xlu0 %982 }
 0x1ef   : > { %1839 = vmatpush3.bf16.msra.mxu0 %v856_v59  ;;  %1888 = vmatpush3.bf16.msra.mxu1 %v856_v59 }
 0x1f0   : > { %1840 = vmatprep.subr.bf16.mxu0 %v855_v61  ;;  %1881 = vmatprep.subr.bf16.mxu1 %v855_v61  ;;  %v978_v30 = vpop.permute.xlu1 %977  ;;  %v993_v31 = vpop.permute.xlu0 %992 }
 0x1f3   : > { %1841 = vmatpush3.bf16.msra.mxu0 %v855_v61  ;;  %1889 = vmatpush3.bf16.msra.mxu1 %v855_v61 }
 0x1f4   : > { %v988_v3 = vpop.permute.xlu1 %987  ;;  %v2522_v38 = vpop.permute.xlu0 %1002 }
 0x1f6   : > { %1843 = vmatmul.mubr.bf16.vlgmr.msra.gmra.mxu0 %v1975_v54  ;;  %1855 = vmatmul.mubr.bf16.vlgmr.msra.gmra.mxu1 %v1976_v51 }
 0x1f7   : > { %1846 = vmatprep.mubr.bf16.mxu0 %v1977_v63  ;;  %1858 = vmatprep.mubr.bf16.mxu1 %v1978_v53 }
 0x1f8   : > { %v998_v39 = vpop.permute.xlu1 %997  ;;  %v1013_v59 = vpop.permute.xlu0 %1012 }
 0x1fc   : > { %v1008_v60 = vpop.permute.xlu1 %1007 }
 0x1fe   : > { %1847 = vmatmul.mubr.bf16.gmra.mxu0 %v1979_v0  ;;  %1859 = vmatmul.mubr.bf16.gmra.mxu1 %v1980_v1 }
 0x1ff   : > { %1850 = vmatprep.mubr.bf16.mxu0 %v1981_v2  ;;  %1862 = vmatprep.mubr.bf16.mxu1 %v1982_v4 }
 0x206   : > { %1851 = vmatmul.mubr.bf16.gmra.mxu0 %v1983_v5  ;;  %1863 = vmatmul.mubr.bf16.gmra.mxu1 %v1984_v6 }
 0x207   : > { %1866 = vmatprep.mubr.bf16.mxu1 %v1985_v7 }
 0x20e   : > { %1867 = vmatmul.mubr.bf16.gmra.mxu1 %v1986_v8 }
 0x20f   : > { %1870 = vmatprep.mubr.bf16.mxu1 %v1987_v9 }
 0x216   : > { %1871 = vmatmul.mubr.bf16.gmra.mxu1 %v1988_v11 }
 0x2b6   : > { %v1844_v32 = vpop.f32.mrf.mxu0  ;;  %v1856_v33 = vpop.f32.mrf.mxu1 }
 0x2b7   : > { %v1194_v56 = vadd.f32 %v1844_v32, %v908_v16  ;;  %v1242_v40 = vadd.f32 %v1856_v33, %v968_v28 }
 0x2b8   : > { %v1185_v34 = vpop.f32.mrf.mxu0  ;;  %v1233_v35 = vpop.f32.mrf.mxu1 }
 0x2b9   : > { %v1186_v12 = vadd.f32 %v1185_v34, %v898_v14  ;;  %v1234_v18 = vadd.f32 %v1233_v35, %v958_v26  ;;  %v1018_v14 = vpop.permute.xlu1 %1017 }
 0x2ba   : > { %v1845_v36 = vpop.f32.mrf.mxu0  ;;  %v1857_v37 = vpop.f32.mrf.mxu1 }
 0x2bb   : > { %v1197_v41 = vadd.f32 %v1845_v36, %v913_v15  ;;  %v1245_v10 = vadd.f32 %v1857_v37, %v973_v27 }
 0x2bc   : > { %v1188_v42 = vpop.f32.mrf.mxu0  ;;  %v1236_v43 = vpop.f32.mrf.mxu1 }
 0x2bd   : > { %v1679_v44 = vpack.c.bf16 %v1197_v41, %v1194_v56  ;;  %v1709_v45 = vpack.c.bf16 %v1245_v10, %v1242_v40  ;;  %v1189_v46 = vadd.f32 %v1188_v42, %v903_v13  ;;  %v1237_v47 = vadd.f32 %v1236_v43, %v963_v25  ;;  %v1023_v13 = vpop.permute.xlu0 %1022 }
 0x2be   : > { %v1848_v48 = vpop.f32.mrf.mxu0  ;;  %v1860_v49 = vpop.f32.mrf.mxu1 }
 0x2bf   : > { %1751 = vst [vmem:[%s2524_s16 + $0x8] sm:$0xff] %v1679_v44   ;;  %1757 = vst [vmem:[%s2524_s16 + $0x38] sm:$0xff] %v1709_v45   ;;  %v1674_v55 = vpack.c.bf16 %v1189_v46, %v1186_v12  ;;  %v1704_v57 = vpack.c.bf16 %v1237_v47, %v1234_v18  ;;  %v1210_v54 = vadd.f32 %v1848_v48, %v928_v21 }
 0x2c0   : > { %v1201_v58 = vpop.f32.mrf.mxu0  ;;  %v1249_v52 = vpop.f32.mrf.mxu1  ;;  %v1258_v51 = vadd.f32 %v1860_v49, %v988_v3 }
 0x2c1   : > { %1675 = vst [vmem:[%s2524_s16] sm:$0xff] %v1674_v55   ;;  %1756 = vst [vmem:[%s2524_s16 + $0x30] sm:$0xff] %v1704_v57   ;;  %v1202_v0 = vadd.f32 %v1201_v58, %v918_v19  ;;  %v1250_v1 = vadd.f32 %v1249_v52, %v978_v30  ;;  %v1033_v32 = vpop.permute.xlu0 %1032 }
 0x2c2   : > { %v1849_v50 = vpop.f32.mrf.mxu0  ;;  %v1861_v61 = vpop.f32.mrf.mxu1 }
 0x2c3   : > { %v1213_v63 = vadd.f32 %v1849_v50, %v933_v20  ;;  %v1261_v53 = vadd.f32 %v1861_v61, %v993_v31 }
 0x2c4   : > { %v1204_v2 = vpop.f32.mrf.mxu0  ;;  %v1252_v4 = vpop.f32.mrf.mxu1 }
 0x2c5   : > { %v1689_v5 = vpack.c.bf16 %v1213_v63, %v1210_v54  ;;  %v1719_v6 = vpack.c.bf16 %v1261_v53, %v1258_v51  ;;  %v1205_v7 = vadd.f32 %v1204_v2, %v2509_v17  ;;  %v1253_v8 = vadd.f32 %v1252_v4, %v983_v29  ;;  %v1043_v40 = vpop.permute.xlu0 %1042 }
 0x2c6   : > { %v1852_v9 = vpop.f32.mrf.mxu0  ;;  %v1864_v11 = vpop.f32.mrf.mxu1 }
 0x2c7   : > { %1753 = vst [vmem:[%s2524_s16 + $0x18] sm:$0xff] %v1689_v5   ;;  %1759 = vst [vmem:[%s2524_s16 + $0x48] sm:$0xff] %v1719_v6   ;;  %v1684_v15 = vpack.c.bf16 %v1205_v7, %v1202_v0  ;;  %v1714_v16 = vpack.c.bf16 %v1253_v8, %v1250_v1  ;;  %v1226_v26 = vadd.f32 %v1852_v9, %v2517_v24  ;;  %v1028_v24 = vpop.permute.xlu1 %1027 }
 0x2c8   : > { %v1217_v20 = vpop.f32.mrf.mxu0  ;;  %v1265_v19 = vpop.f32.mrf.mxu1  ;;  %v1274_v17 = vadd.f32 %v1864_v11, %v1008_v60 }
 0x2c9   : > { %1752 = vst [vmem:[%s2524_s16 + $0x10] sm:$0xff] %v1684_v15   ;;  %1758 = vst [vmem:[%s2524_s16 + $0x40] sm:$0xff] %v1714_v16   ;;  %v1218_v29 = vadd.f32 %v1217_v20, %v2513_v62  ;;  %v1266_v30 = vadd.f32 %v1265_v19, %v998_v39  ;;  %v1053_v46 = vpop.permute.xlu0 %1052 }
 0x2ca   : > { %v1853_v21 = vpop.f32.mrf.mxu0  ;;  %v1865_v25 = vpop.f32.mrf.mxu1 }
 0x2cb   : > { %v1229_v27 = vadd.f32 %v1853_v21, %v2515_v23  ;;  %v1277_v28 = vadd.f32 %v1865_v25, %v1013_v59  ;;  %v1038_v12 = vpop.permute.xlu1 %1037 }
 0x2cc   : > { %v1220_v31 = vpop.f32.mrf.mxu0  ;;  %v1268_v3 = vpop.f32.mrf.mxu1 }
 0x2cd   : > { %v1699_v33 = vpack.c.bf16 %v1229_v27, %v1226_v26  ;;  %v1729_v34 = vpack.c.bf16 %v1277_v28, %v1274_v17  ;;  %v1221_v35 = vadd.f32 %v1220_v31, %v2511_v22  ;;  %v1269_v36 = vadd.f32 %v1268_v3, %v2522_v38 }
 0x2ce   : > { %v1868_v37 = vpop.f32.mrf.mxu1 }
 0x2cf   : > { %1755 = vst [vmem:[%s2524_s16 + $0x28] sm:$0xff] %v1699_v33   ;;  %1761 = vst [vmem:[%s2524_s16 + $0x58] sm:$0xff] %v1729_v34   ;;  %v1694_v23 = vpack.c.bf16 %v1221_v35, %v1218_v29  ;;  %v1724_v56 = vpack.c.bf16 %v1269_v36, %v1266_v30  ;;  %v1290_v41 = vadd.f32 %v1868_v37, %v1028_v24  ;;  %v1048_v47 = vpop.permute.xlu1 %1047 }
 0x2d0   : > { %v1281_v62 = vpop.f32.mrf.mxu1 }
 0x2d1   : > { %1754 = vst [vmem:[%s2524_s16 + $0x20] sm:$0xff] %v1694_v23   ;;  %1760 = vst [vmem:[%s2524_s16 + $0x50] sm:$0xff] %v1724_v56   ;;  %v1282_v38 = vadd.f32 %v1281_v62, %v1018_v14 }
 0x2d2   : > { %v1869_v39 = vpop.f32.mrf.mxu1 }
 0x2d3   : > { %v1293_v10 = vadd.f32 %v1869_v39, %v1033_v32 }
 0x2d4   : > { %v1284_v22 = vpop.f32.mrf.mxu1 }
 0x2d5   : > { %v1739_v18 = vpack.c.bf16 %v1293_v10, %v1290_v41  ;;  %v1285_v42 = vadd.f32 %v1284_v22, %v1023_v13 }
 0x2d6   : > { %v1872_v43 = vpop.f32.mrf.mxu1 }
 0x2d7   : > { %1763 = vst [vmem:[%s2524_s16 + $0x68] sm:$0xff] %v1739_v18   ;;  %v1734_v44 = vpack.c.bf16 %v1285_v42, %v1282_v38  ;;  %v1306_v49 = vadd.f32 %v1872_v43, %v1048_v47 }
 0x2d8   : > { %v1297_v45 = vpop.f32.mrf.mxu1 }
 0x2d9   : > { %1762 = vst [vmem:[%s2524_s16 + $0x60] sm:$0xff] %v1734_v44   ;;  %v1298_v58 = vadd.f32 %v1297_v45, %v1038_v12 }
 0x2da   : > { %v1873_v48 = vpop.f32.mrf.mxu1 }
 0x2db   : > { %v1309_v55 = vadd.f32 %v1873_v48, %v1053_v46 }
 0x2dc   : > { %v1300_v57 = vpop.f32.mrf.mxu1 }
 0x2dd   : > { %v1749_v52 = vpack.c.bf16 %v1309_v55, %v1306_v49  ;;  %v1301_v59 = vadd.f32 %v1300_v57, %v1043_v40 }
 0x2df   : > { %1765 = vst [vmem:[%s2524_s16 + $0x78] sm:$0xff] %v1749_v52   ;;  %v1744_v60 = vpack.c.bf16 %v1301_v59, %v1298_v58 }
 0x2e1   : > { %1764 = vst [vmem:[%s2524_s16 + $0x70] sm:$0xff] %v1744_v60  }
 0x2e2   : > { %2002 = shalt.err (!%p1999_p5)
}
 0x2e3   : > { %s2003_s10 = scalar_lea.hbm %s2551_s21, 2048  ;;  %s2007_s16 = scalar_lea.hbm %s2611_s7, 4096 }
 0x2e4   : > { %p2004_p6 = scmp.ne.s32.totalorder %s2551_s21, %s2003_s10  ;;  %p2008_p10 = scmp.lt.s32.totalorder %s2551_s21, %s2611_s7 }
 0x2e5   : > { %p2009_p11 = scmp.lt.s32.totalorder %s2007_s16, %s2003_s10 }
 0x2e6   : > { %p2005_p7 = pnand %p2004_p6, %p2153_p4 }
 0x2e7   : > { %p2010_p12 = por %p2009_p11, %p2008_p10 }
 0x2e8   : > { %p2006_p9 = pneg %p2005_p7 }
 0x2ea   : > { %p2011_p13 = pnand %p2010_p12, %p2006_p9 }
 0x2ec   : > { %2014 = shalt.err (!%p2011_p13)
}
 0x2ed   : > { %s2071_s20 = smov 64   ;;  %s2072_s22 = smov 4  }
 0x2ee   : > { %1890 = dma.vmem_to_hbm [thread:$0]  (%p2153_p4), %s2553_s18, 2048, %s2551_s21, %s2559_s27, %s2071_s20, %s2071_s20, %s2072_s22  }
 0x2ef PF: > { %p1896_p0 = scmp.ge.s32.totalorder %s2065_s29, 2  ;;  %s1502_s23 = sand.u32 1, %s2045_s24  }
 0x2f0   : > { %s1503_s30 = scalar_lea.sflag [#allocation3], %s1502_s23 }
 0x2f1   : > { %p1893_p1 = pnand %p1896_p0, %p2160_p8 }
 0x2f3   : > { %p1894_p2 = pneg %p1893_p1 }
 0x2f5   : > { %2040 = dma.done.wait (%p1894_p2), %s1503_s30, 2048  }
 0x2f6   : > { %2042 = vsyncadd (%p1894_p2), %s1503_s30, 4294965248  ;;  %s20_s29 = sadd.s32 1, %s2065_s29   ;;  %s2614_s24 = smov %s2049_s25 }
 0x2f7   : > { %p17_p3 = scmp.ge.s32.totalorder %s20_s29, 4   ;;  %s2615_s25 = smov %s2053_s26 }
 0x2f8   : > { %s2616_s26 = smov %s2166_s14  ;;  %s2617_s27 = smov %s2061_s28 }
 0x2f9   : > { %s2618_s28 = smov %s2620_s9  ;;  %19 = sbr.rel (!%p17_p3) target bundleno = 4 (0x4), region = 83 }
 0x2fe   :  { %1508 = vsyncpa [#allocation3], 1 }
 0x2ff   :  { %1510 = vsyncpa [#allocation3 + $0x1], 1 }

</bundles_post_ra>
